<compile_context>
chip_gen: v7x
topology: tpu7x:2x2x1
jax: 0.10.0
libtpu: 0.0.40
codegen_flags: <defaults>
</compile_context>

<pallas_src>
import math

import jax
import jax.numpy as jnp
from jax.experimental import pallas as pl
from jax.experimental.pallas import tpu as pltpu


def _layer_scale_kernel(x_ref, gamma_ref, o_ref):
    # x_ref: (TR, TL) tile in VMEM; gamma_ref: (1, TL) row in VMEM (x.dtype).
    # Pure VPU elementwise work; the kernel is HBM-bandwidth bound.
    o_ref[...] = (x_ref[...] * gamma_ref[...]).astype(o_ref.dtype)


def layer_scale(x: jax.Array,
                gamma: jax.Array,
                *,
                target_block_bytes: int = 4 * 1024 * 1024,
                donate: bool = False) -> jax.Array:
    """Computes x * gamma with gamma broadcast over the last dim of x."""
    orig_shape = x.shape
    dim = orig_shape[-1]
    assert gamma.shape == (dim,), (gamma.shape, dim)

    rows = math.prod(orig_shape[:-1]) if len(orig_shape) > 1 else 1
    x2d = x.reshape(rows, dim)

    # Multiply in the activation dtype (bf16 VALU on v6e/v7x, no extra casts).
    gamma_cast = gamma.astype(x.dtype)

    # --- Lane-dense packing ---------------------------------------------------
    # Minimal k such that (k * dim) % 128 == 0.  Pack k logical rows into one
    # lane-row; stores are then always full 128-lane multiples (unmasked vst).
    k = 1 if dim % 128 == 0 else 128 // math.gcd(dim, 128)
    lanes = k * dim

    pad_rows = (-rows) % k
    if pad_rows:
        # Pad < k (<= 127) zero rows so packing divides evenly; the padded rows
        # are sliced off after the kernel.  Far cheaper than masked stores.
        x2d = jnp.pad(x2d, ((0, pad_rows), (0, 0)))
    rows_total = rows + pad_rows
    rows_p = rows_total // k
    x2d = x2d.reshape(rows_p, lanes)
    gamma_op = jnp.tile(gamma_cast, k).reshape(1, lanes)

    # --- Tile sizing ------------------------------------------------------------
    itemsize = jnp.dtype(x.dtype).itemsize
    sublane = max(8, 32 // itemsize)          # 8 (f32) / 16 (bf16) / 32 (i8)

    # Lane tile: full width if a single (sublane, lanes) stripe fits the budget,
    # else the largest 128-multiple divisor of lanes that does (2-D grid).
    if sublane * lanes * itemsize <= target_block_bytes:
        tl = lanes
    else:
        max_tl = max(128, target_block_bytes // (sublane * itemsize))
        tl = None
        t = 128
        while t <= lanes:
            if lanes % t == 0 and t <= max_tl:
                tl = t
            t += 128
        if tl is None:
            # TODO(synk): no 128-multiple divisor of lanes (huge odd D); fall
            # back to the full lane extent and rely on the raised VMEM limit.
            tl = lanes

    # Row tile: fill ~target_block_bytes, sublane aligned.
    tr = max(sublane, target_block_bytes // (tl * itemsize))
    tr = (tr // sublane) * sublane
    if tr >= rows_p:
        tr = rows_p                            # full extent is always legal

    lane_steps = pl.cdiv(lanes, tl)
    row_steps = pl.cdiv(rows_p, tr)
    # Guarantee >= 2 grid steps when possible so both v7x TensorCores get work.
    if row_steps * lane_steps < 2 and rows_p >= 2 * sublane:
        tr = max(sublane, (rows_p // 2 // sublane) * sublane)
        row_steps = pl.cdiv(rows_p, tr)

    # Explicit scoped-VMEM budget: double-buffered input + output blocks plus
    # the (tiny) gamma row, with headroom.  Stays under v7x's 64 MiB physical.
    block_bytes = tr * tl * itemsize
    vmem_needed = 4 * block_bytes + 2 * tl * itemsize
    vmem_limit = int(min(max(vmem_needed + (8 << 20), 16 << 20), 48 << 20))

    cost = pl.CostEstimate(
        flops=rows * dim,
        transcendentals=0,
        bytes_accessed=2 * rows * dim * itemsize + dim * itemsize,
    )

    out = pl.pallas_call(
        _layer_scale_kernel,
        out_shape=jax.ShapeDtypeStruct((rows_p, lanes), x.dtype),
        grid_spec=pl.GridSpec(
            grid=(row_steps, lane_steps),
            in_specs=[
                pl.BlockSpec((tr, tl), lambda i, j: (i, j)),    # x tiles
                pl.BlockSpec((1, tl), lambda i, j: (0, j)),     # gamma row
            ],
            out_specs=pl.BlockSpec((tr, tl), lambda i, j: (i, j)),
        ),
        compiler_params=pltpu.CompilerParams(
            # All tiles fully independent -> shard across both v7x TCs.
            dimension_semantics=("parallel", "parallel"),
            vmem_limit_bytes=vmem_limit,
        ),
        cost_estimate=cost,
        # Optional in-place (mirrors LayerScale(inplace=True)); only when no
        # padding copy was made and the caller actually donates x.
        input_output_aliases=({0: 0} if (donate and pad_rows == 0) else {}),
    )(x2d, gamma_op)

    out = out.reshape(rows_total, dim)
    if pad_rows:
        out = out[:rows]
    return out.reshape(orig_shape)


if __name__ == "__main__":
    # Module params: dim (hidden) = 32, init_values = 1e-5 -> gamma = 1e-5 * ones(dim)
    batch, seq, dim = 2, 8, 32
    init_values = 1e-5

    key = jax.random.PRNGKey(0)
    x = jax.random.normal(key, (batch, seq, dim), dtype=jnp.float32)
    gamma = init_values * jnp.ones((dim,), dtype=jnp.float32)

    # Plain-JAX reference of the PyTorch forward.
    y_ref = x * gamma

    y = layer_scale(x, gamma)
    jax.block_until_ready(y)

    assert y.shape == x.shape and y.dtype == x.dtype
    assert jnp.allclose(y, y_ref, atol=1e-7, rtol=1e-6), "mismatch vs reference"

    print("KERNEL_OK")
</pallas_src>

<mosaic_0001>
module attributes {stable_mosaic.version = 11 : i64} {
  func.func @_layer_scale_kernel(%arg0: i32, %arg1: i32, %arg2: memref<4x128xf32, #tpu.memory_space<vmem>>, %arg3: memref<1x128xf32, #tpu.memory_space<vmem>>, %arg4: memref<4x128xf32, #tpu.memory_space<vmem>>) attributes {dimension_semantics = [#tpu.dimension_semantics<parallel>, #tpu.dimension_semantics<parallel>], iteration_bounds = array<i64: 1, 1>, scalar_prefetch = 0 : i64, scratch_operands = 0 : i64, tpu.core_type = #tpu.core_type<tc>, window_params = [{transform_indices = @transform_0, window_bounds = array<i64: 4, 128>}, {transform_indices = @transform_1, window_bounds = array<i64: 1, 128>}, {transform_indices = @transform_2, window_bounds = array<i64: 4, 128>}]} {
    %c0 = arith.constant 0 : index
    %c0_0 = arith.constant 0 : index
    %0 = vector.load %arg2[%c0, %c0_0] : memref<4x128xf32, #tpu.memory_space<vmem>>, vector<4x128xf32>
    %c0_1 = arith.constant 0 : index
    %c0_2 = arith.constant 0 : index
    %1 = vector.load %arg3[%c0_1, %c0_2] : memref<1x128xf32, #tpu.memory_space<vmem>>, vector<1x128xf32>
    %2 = vector.broadcast %1 : vector<1x128xf32> to vector<4x128xf32>
    %3 = arith.mulf %0, %2 : vector<4x128xf32>
    %c0_3 = arith.constant 0 : index
    %c0_4 = arith.constant 0 : index
    %4 = vector.load %arg4[%c0_3, %c0_4] : memref<4x128xf32, #tpu.memory_space<vmem>>, vector<4x128xf32>
    tpu.vector_store %arg4[%c0_3, %c0_4], %3 {strides = array<i32>} : memref<4x128xf32, #tpu.memory_space<vmem>>, vector<4x128xf32>,
    return
  }
  func.func @transform_0(%arg0: i32, %arg1: i32) -> (i32, i32) {
    %c0_i32 = arith.constant 0 : i32
    return %arg0, %arg1 : i32, i32
  }
  func.func @transform_1(%arg0: i32, %arg1: i32) -> (i32, i32) {
    %c0_i32 = arith.constant 0 : i32
    %c0_i32_0 = arith.constant 0 : i32
    return %c0_i32, %arg1 : i32, i32
  }
  func.func @transform_2(%arg0: i32, %arg1: i32) -> (i32, i32) {
    %c0_i32 = arith.constant 0 : i32
    return %arg0, %arg1 : i32, i32
  }
}

</mosaic_0001>

<bundles_post_ra>
// kernel: tpu_custom_call.1
= control target key start
LH: loop header
LB: loop body
LE: loop exit
PB: predicated region body
PF: predicated region fallthrough
CT: control target
= control target key end

     0   :  { %7 = vsyncpa [#allocation3], 0  ;;  %s144_s0 = inlined_call_operand.hbm [shape: f32[4,128], index: 0, kind: input, shape index: {}]   ;;  %s145_s1 = inlined_call_operand.vmem [shape: f32[1,128], index: 1, kind: input, shape index: {}]   ;;  %s146_s2 = inlined_call_operand.hbm [shape: f32[4,128], index: 2, kind: output, shape index: {}]  }
   0x1   :  { %8 = vsyncpa [#allocation4], 0  ;;  %s100_s9 = smov [#allocation2]   ;;  %s52_s13 = scalar_lea.hbm %s144_s0, 64 }
   0x2   :  { %s15_s10 = sshll.u32 %s100_s9, 4  ;;  %p53_p0 = scmp.ne.s32.totalorder %s144_s0, %s52_s13  ;;  %s16_s10 = int_to_ptr.vmem [resolvable:$true] %s15_s10 }
   0x3   :  { %p56_p1 = scmp.lt.u32.totalorder %s52_s13, %s144_s0 }
   0x5   :  { %p58_p2 = pnand %p56_p1, %p53_p0 }
   0x7   :  { %61 = shalt.err (!%p58_p2)
}
   0x8   :  { %s62_s18 = scalar_lea.vmem %s16_s10, 64  ;;  %p67_p4 = scmp.lt.s32.totalorder %s16_s10, %s16_s10 }
   0x9   :  { %p63_p3 = scmp.ne.s32.totalorder %s16_s10, %s62_s18  ;;  %p68_p5 = scmp.lt.s32.totalorder %s62_s18, %s62_s18 }
   0xb   :  { %p69_p6 = por %p68_p5, %p67_p4 }
   0xd   :  { %p70_p7 = pnand %p69_p6, %p63_p3 }
   0xf   :  { %73 = shalt.err (!%p70_p7)
}
  0x10   :  { %18 = dma.hbm_to_vmem [thread:$0]  %s144_s0, 64, %s16_s10, [#allocation3]  }
  0x11   :  { %96 = dma.done.wait [#allocation3], 64  }
  0x12   :  { %97 = vsyncadd [#allocation3], 4294967232  ;;  %s101_s21 = smov [#allocation5]   ;;  %v24_v0 = vld [vmem:[#allocation2] sm:$0xf] }
  0x13   :  { %s40_s22 = sshll.u32 %s101_s21, 4  ;;  %v49_v1 = vld [vmem:[%s145_s1] ss:$0 sm:$0xff]  ;;  %s41_s22 = int_to_ptr.vmem [resolvable:$true] %s40_s22 }
  0x14   :  { %v32_v2 = vmul.f32 %v49_v1, %v24_v0  ;;  %s74_s25 = scalar_lea.vmem %s41_s22, 64  ;;  %p79_p9 = scmp.lt.s32.totalorder %s41_s22, %s41_s22 }
  0x15   :  { %p75_p8 = scmp.ne.s32.totalorder %s41_s22, %s74_s25  ;;  %p80_p10 = scmp.lt.s32.totalorder %s74_s25, %s74_s25 }
  0x16   :  { %33 = vst [vmem:[#allocation5] sm:$0xf] %v32_v2 }
  0x17   :  { %p81_p11 = por %p80_p10, %p79_p9 }
  0x19   :  { %p82_p12 = pnand %p81_p11, %p75_p8 }
  0x1b   :  { %85 = shalt.err (!%p82_p12)
}
  0x1c   :  { %s86_s27 = scalar_lea.hbm %s146_s2, 64 }
  0x1d   :  { %p87_p13 = scmp.ne.s32.totalorder %s146_s2, %s86_s27  ;;  %p90_p0 = scmp.lt.u32.totalorder %s86_s27, %s146_s2 }
  0x1f   :  { %p92_p1 = pnand %p90_p0, %p87_p13 }
  0x21   :  { %95 = shalt.err (!%p92_p1)
}
  0x22   :  { %43 = dma.vmem_to_hbm [thread:$0]  %s41_s22, 64, %s146_s2, [#allocation4]  }
  0x23   :  { %98 = dma.done.wait [#allocation4], 64  }
  0x24   :  { %99 = vsyncadd [#allocation4], 4294967232 }
  0x25   :  { %47 = vsyncpa [#allocation3], 1 }
  0x26   :  { %48 = vsyncpa [#allocation4], 1 }

</bundles_post_ra>
